<compile_context>
chip_gen: v5e
topology: v5e:2x2
jax: 0.10.0
libtpu: 0.0.40
codegen_flags: <defaults>
</compile_context>

<pallas_src>
import functools
import math

import numpy as np
import jax
import jax.numpy as jnp
from jax.experimental import pallas as pl
from jax.experimental.pallas import tpu as pltpu


# ----------------------------------------------------------------------------
# Args (synthetic, small, deterministic) -- mirrors the PyTorch RecipeNetArgs
# ----------------------------------------------------------------------------
class RecipeNetArgs:
    def __init__(self):
        self.gain = 1.0

        # top-level / mash / ferment scalars
        self.num_toplvl_inputs = 6
        self.num_mash_steps = 3
        self.num_mash_step_types = 4
        self.num_ferment_stage_inputs = 4

        # grains
        self.num_grain_slots = 4
        self.grain_type_embed_size = 8
        self.num_grain_types = 16

        # adjuncts
        self.num_adjunct_slots = 3
        self.adjunct_type_embed_size = 8
        self.num_adjunct_types = 12

        # hops
        self.num_hop_slots = 4
        self.hop_type_embed_size = 8
        self.num_hop_types = 10
        self.num_hop_stage_types = 3

        # miscs
        self.num_misc_slots = 2
        self.misc_type_embed_size = 8
        self.num_misc_types = 9
        self.num_misc_stage_types = 3

        # microorganisms
        self.num_microorganism_slots = 2
        self.microorganism_type_embed_size = 8
        self.num_microorganism_types = 8
        self.num_mo_stage_types = 2

        # derived split sizes (same formulas as the encoder)
        self.num_mash_step_inputs = (
            self.num_mash_steps * self.num_mash_step_types
            + self.num_mash_steps
            + self.num_mash_steps
        )
        self.num_grain_slot_inputs = (
            self.num_grain_slots * self.grain_type_embed_size + self.num_grain_slots
        )
        self.num_adjunct_slot_inputs = (
            self.num_adjunct_slots * self.adjunct_type_embed_size
            + self.num_adjunct_slots
        )
        self.num_hop_slot_inputs = (
            self.num_hop_slots * self.hop_type_embed_size
            + self.num_hop_slots * self.num_hop_stage_types
            + self.num_hop_slots
            + self.num_hop_slots
        )
        self.num_misc_slot_inputs = (
            self.num_misc_slots * self.misc_type_embed_size
            + self.num_misc_slots * self.num_misc_stage_types
            + self.num_misc_slots
            + self.num_misc_slots
        )
        self.num_microorganism_slot_inputs = (
            self.num_microorganism_slots * self.microorganism_type_embed_size
            + self.num_microorganism_slots * self.num_mo_stage_types
        )

        self.num_inputs = (
            self.num_toplvl_inputs
            + self.num_mash_step_inputs
            + self.num_ferment_stage_inputs
            + self.num_grain_slot_inputs
            + self.num_adjunct_slot_inputs
            + self.num_hop_slot_inputs
            + self.num_misc_slot_inputs
            + self.num_microorganism_slot_inputs
        )


class RecipeNetData:
    def __init__(self):
        pass


# ----------------------------------------------------------------------------
# Deterministic xavier-normal init (matches nn.init.xavier_normal_ semantics)
# torch Linear weight layout: (out_features, in_features)
# ----------------------------------------------------------------------------
def xavier_normal(key, out_features, in_features, gain):
    std = gain * math.sqrt(2.0 / (in_features + out_features))
    return std * jax.random.normal(key, (out_features, in_features), dtype=jnp.float32)


# ----------------------------------------------------------------------------
# Static "plan": section offsets + block-diagonal packed-weight layout
# ----------------------------------------------------------------------------
def _build_plan(args):
    split_sizes = [
        args.num_toplvl_inputs,
        args.num_mash_step_inputs,
        args.num_ferment_stage_inputs,
        args.num_grain_slot_inputs,
        args.num_adjunct_slot_inputs,
        args.num_hop_slot_inputs,
        args.num_misc_slot_inputs,
        args.num_microorganism_slot_inputs,
    ]
    sec_off = [0]
    for s in split_sizes:
        sec_off.append(sec_off[-1] + s)
    assert sec_off[-1] == args.num_inputs

    # (name, section index, n_slots, embed_size, n_types); the embedding block
    # is the FIRST chunk of each section, exactly as in the PyTorch forward.
    specs = [
        ("grain", 3, args.num_grain_slots, args.grain_type_embed_size,
         args.num_grain_types),
        ("adjunct", 4, args.num_adjunct_slots, args.adjunct_type_embed_size,
         args.num_adjunct_types),
        ("hop", 5, args.num_hop_slots, args.hop_type_embed_size,
         args.num_hop_types),
        ("misc", 6, args.num_misc_slots, args.misc_type_embed_size,
         args.num_misc_types),
        ("mo", 7, args.num_microorganism_slots,
         args.microorganism_type_embed_size, args.num_microorganism_types),
    ]

    decoders = []
    col_base = 0
    for name, sec_idx, n_slots, e, n_types in specs:
        decoders.append(dict(name=name, n_slots=n_slots, n_types=n_types,
                             embed=e, emb_start=sec_off[sec_idx],
                             col_base=col_base))
        col_base += n_slots * n_types       # every slot gets its own out columns

    total_cols = col_base
    n_lanes = max(128, ((total_cols + 127) // 128) * 128)   # lane-dense output

    return dict(split_sizes=split_sizes, sec_off=sec_off, decoders=decoders,
                total_cols=total_cols, n_lanes=n_lanes)


def pack_block_diag_weights(plan, params, num_inputs):
    """Pack all five torch-layout (T_d, E) weights into a single block-diagonal
    (num_inputs, n_lanes) slab.  Done ONCE at init (plain numpy, not per fwd)."""
    w = np.zeros((num_inputs, plan["n_lanes"]), dtype=np.float32)
    for d in plan["decoders"]:
        w_t = np.asarray(params[d["name"] + "_w"]).T          # (embed, n_types)
        e, nt = d["embed"], d["n_types"]
        for s in range(d["n_slots"]):
            r0 = d["emb_start"] + s * e
            c0 = d["col_base"] + s * nt
            w[r0:r0 + e, c0:c0 + nt] = w_t
    return jnp.asarray(w)


# ----------------------------------------------------------------------------
# Fused Pallas kernel: all five type decoders, all slots, in ONE matmul.
#   x_ref: (B, F)        full x_hat in VMEM
#   w_ref: (F, n_lanes)  block-diagonal packed transposed weights
#   o_ref: (B, n_lanes)  lane-dense logits (256 = 2x128 -> unmasked stores)
# ----------------------------------------------------------------------------
def _fused_type_decoder_kernel(x_ref, w_ref, o_ref):
    o_ref[...] = jnp.dot(x_ref[...], w_ref[...],
                         preferred_element_type=jnp.float32)


def fused_type_decode(x_hat, w_big, n_lanes):
    batch = x_hat.shape[0]
    return pl.pallas_call(
        _fused_type_decoder_kernel,
        out_shape=jax.ShapeDtypeStruct((batch, n_lanes), jnp.float32),
        # No grid (single invocation) -> no degenerate pipeline bookkeeping.
        in_specs=[
            pl.BlockSpec(memory_space=pltpu.MemorySpace.VMEM),
            pl.BlockSpec(memory_space=pltpu.MemorySpace.VMEM),
        ],
        out_specs=pl.BlockSpec(memory_space=pltpu.MemorySpace.VMEM),
    )(x_hat, w_big)


# ----------------------------------------------------------------------------
# Forward pass (splits as fused XLA slices, all type decoders in ONE kernel)
# ----------------------------------------------------------------------------
def _forward_impl(x_hat, w_big, *, args, plan):
    out = {}
    so = plan["sec_off"]
    names = ["x_hat_toplvl", "x_hat_mash_steps", "x_hat_ferment_stages",
             "x_hat_grains", "x_hat_adjuncts", "x_hat_hops", "x_hat_miscs",
             "x_hat_mos"]
    secs = {}
    for i, nm in enumerate(names):
        secs[nm] = x_hat[:, so[i]:so[i + 1]]
        out[nm] = secs[nm]

    # mash steps
    nms = args.num_mash_steps
    o1 = nms * args.num_mash_step_types
    xm = secs["x_hat_mash_steps"]
    out["dec_mash_step_type_onehot"] = xm[:, :o1]
    out["dec_mash_step_times"] = xm[:, o1:o1 + nms]
    out["dec_mash_step_avg_temps"] = xm[:, o1 + nms:o1 + 2 * nms]

    # grains
    ngs, ge = args.num_grain_slots, args.grain_type_embed_size
    xg = secs["x_hat_grains"]
    out["dec_grain_type_embed"] = xg[:, :ngs * ge]
    out["dec_grain_amts"] = xg[:, ngs * ge:ngs * ge + ngs]

    # adjuncts
    nas, ae = args.num_adjunct_slots, args.adjunct_type_embed_size
    xa = secs["x_hat_adjuncts"]
    out["dec_adjunct_amts"] = xa[:, nas * ae:nas * ae + nas]

    # hops
    nhs, he = args.num_hop_slots, args.hop_type_embed_size
    nhst = args.num_hop_stage_types
    xh = secs["x_hat_hops"]
    p = nhs * he
    out["dec_hop_stage_type_onehot"] = xh[:, p:p + nhs * nhst]
    p += nhs * nhst
    out["dec_hop_times"] = xh[:, p:p + nhs]
    p += nhs
    out["dec_hop_concentrations"] = xh[:, p:p + nhs]

    # miscs
    nmi, me = args.num_misc_slots, args.misc_type_embed_size
    nmst = args.num_misc_stage_types
    xmi = secs["x_hat_miscs"]
    p = nmi * me
    out["dec_misc_stage_type_onehot"] = xmi[:, p:p + nmi * nmst]
    p += nmi * nmst
    out["dec_misc_times"] = xmi[:, p:p + nmi]
    p += nmi
    out["dec_misc_amts"] = xmi[:, p:p + nmi]

    # microorganisms
    nmo, moe = args.num_microorganism_slots, args.microorganism_type_embed_size
    nmos = args.num_mo_stage_types
    xo = secs["x_hat_mos"]
    out["dec_mo_stage_type_onehot"] = xo[:, nmo * moe:nmo * moe + nmo * nmos]

    # ---- single fused Pallas kernel for all five type decoders ----
    batch = x_hat.shape[0]
    logits = fused_type_decode(x_hat, w_big, plan["n_lanes"])   # (B, 256)
    for d in plan["decoders"]:
        cb, ns, nt = d["col_base"], d["n_slots"], d["n_types"]
        # Contiguous column slab -> reshape only (no transpose needed).
        out["dec_" + d["name"] + "_type_logits"] = (
            logits[:, cb:cb + ns * nt].reshape(batch, ns, nt))

    return out


class RecipeNetFootDecoderPallas:
    """JAX/Pallas equivalent of the PyTorch RecipeNetFootDecoder."""

    def __init__(self, args, params):
        self.args = args
        self.params = params
        self.plan = _build_plan(args)
        # pre-transpose + block-diagonal pack weights ONCE (no per-forward work)
        self.w_big = pack_block_diag_weights(self.plan, params, args.num_inputs)
        self._impl = jax.jit(
            functools.partial(_forward_impl, args=args, plan=self.plan))

    def __call__(self, x_hat):
        out = self._impl(x_hat, self.w_big)
        foots = RecipeNetData()
        for k, v in out.items():
            setattr(foots, k, v)
        return foots


# ----------------------------------------------------------------------------
# Main
# ----------------------------------------------------------------------------
if __name__ == "__main__":
    args = RecipeNetArgs()

    key = jax.random.PRNGKey(0)
    kx, kg, ka, kh, km, ko = jax.random.split(key, 6)

    params = {
        "grain_w": xavier_normal(
            kg, args.num_grain_types, args.grain_type_embed_size, args.gain),
        "adjunct_w": xavier_normal(
            ka, args.num_adjunct_types, args.adjunct_type_embed_size, args.gain),
        "hop_w": xavier_normal(
            kh, args.num_hop_types, args.hop_type_embed_size, args.gain),
        "misc_w": xavier_normal(
            km, args.num_misc_types, args.misc_type_embed_size, args.gain),
        "mo_w": xavier_normal(
            ko, args.num_microorganism_types,
            args.microorganism_type_embed_size, args.gain),
    }

    B = 2
    x_hat = jax.random.normal(kx, (B, args.num_inputs), dtype=jnp.float32)

    decoder = RecipeNetFootDecoderPallas(args, params)
    foots = decoder(x_hat)

    # Block on decoded logits + a couple of pass-through splits.
    outs = [
        foots.dec_grain_type_logits,
        foots.dec_adjunct_type_logits,
        foots.dec_hop_type_logits,
        foots.dec_misc_type_logits,
        foots.dec_mo_type_logits,
        foots.dec_grain_amts,
        foots.dec_mash_step_times,
    ]
    for o in outs:
        jax.block_until_ready(o)

    # Shape checks against the PyTorch semantics.
    assert foots.dec_grain_type_logits.shape == (
        B, args.num_grain_slots, args.num_grain_types)
    assert foots.dec_adjunct_type_logits.shape == (
        B, args.num_adjunct_slots, args.num_adjunct_types)
    assert foots.dec_hop_type_logits.shape == (
        B, args.num_hop_slots, args.num_hop_types)
    assert foots.dec_misc_type_logits.shape == (
        B, args.num_misc_slots, args.num_misc_types)
    assert foots.dec_mo_type_logits.shape == (
        B, args.num_microorganism_slots, args.num_microorganism_types)

    # Numerical checks against plain-JAX references for ALL five decoders.
    def ref_logits(embed_flat, n_slots, e, w):
        return embed_flat.reshape(B, n_slots, e) @ w.T

    checks = [
        (foots.dec_grain_type_logits,
         foots.x_hat_grains[:, :args.num_grain_slots * args.grain_type_embed_size],
         args.num_grain_slots, args.grain_type_embed_size, params["grain_w"]),
        (foots.dec_adjunct_type_logits,
         foots.x_hat_adjuncts[:, :args.num_adjunct_slots * args.adjunct_type_embed_size],
         args.num_adjunct_slots, args.adjunct_type_embed_size, params["adjunct_w"]),
        (foots.dec_hop_type_logits,
         foots.x_hat_hops[:, :args.num_hop_slots * args.hop_type_embed_size],
         args.num_hop_slots, args.hop_type_embed_size, params["hop_w"]),
        (foots.dec_misc_type_logits,
         foots.x_hat_miscs[:, :args.num_misc_slots * args.misc_type_embed_size],
         args.num_misc_slots, args.misc_type_embed_size, params["misc_w"]),
        (foots.dec_mo_type_logits,
         foots.x_hat_mos[:, :args.num_microorganism_slots * args.microorganism_type_embed_size],
         args.num_microorganism_slots, args.microorganism_type_embed_size,
         params["mo_w"]),
    ]
    for got, embed_flat, ns, e, w in checks:
        ref = ref_logits(embed_flat, ns, e, w)
        assert jnp.allclose(ref, got, atol=1e-5), "mismatch vs reference"

    print("KERNEL_OK")
</pallas_src>

<mosaic_0001>
module attributes {stable_mosaic.version = 11 : i64} {
  func.func @_fused_type_decoder_kernel(%arg0: memref<2x189xf32, #tpu.memory_space<vmem>>, %arg1: memref<189x256xf32, #tpu.memory_space<vmem>>, %arg2: memref<2x256xf32, #tpu.memory_space<vmem>>) attributes {dimension_semantics = [], scalar_prefetch = 0 : i64, scratch_operands = 0 : i64, tpu.core_type = #tpu.core_type<tc>} {
    %c0 = arith.constant 0 : index
    %c0_0 = arith.constant 0 : index
    %0 = vector.load %arg0[%c0, %c0_0] : memref<2x189xf32, #tpu.memory_space<vmem>>, vector<2x189xf32>
    %c0_1 = arith.constant 0 : index
    %c0_2 = arith.constant 0 : index
    %1 = vector.load %arg1[%c0_1, %c0_2] : memref<189x256xf32, #tpu.memory_space<vmem>>, vector<189x256xf32>
    %cst = arith.constant dense<0.000000e+00> : vector<2x256xf32>
    %2 = tpu.matmul %0, %1, %cst {dimension_numbers = #tpu.dot_dimension_numbers<[1], [0], [0], [1], [0, 0, 1, 1], [], []>} : vector<2x189xf32>, vector<189x256xf32>, vector<2x256xf32> -> vector<2x256xf32>
    %c0_3 = arith.constant 0 : index
    %c0_4 = arith.constant 0 : index
    %3 = vector.load %arg2[%c0_3, %c0_4] : memref<2x256xf32, #tpu.memory_space<vmem>>, vector<2x256xf32>
    tpu.vector_store %arg2[%c0_3, %c0_4], %2 {strides = array<i32>} : memref<2x256xf32, #tpu.memory_space<vmem>>, vector<2x256xf32>,
    return
  }
}

</mosaic_0001>

<bundles_post_ra>
// kernel: _forward_impl.1
= control target key start
LH: loop header
LB: loop body
LE: loop exit
PB: predicated region body
PF: predicated region fallthrough
CT: control target
= control target key end

     0   :  { %7 = vsyncpa [#allocation3], 0  ;;  %s216_s12 = smov [#allocation2]   ;;  %s217_s14 = smov 256   ;;  %s247_s0 = inlined_call_operand.vmem [shape: f32[2,189], index: 0, kind: input, shape index: {}]   ;;  %s248_s1 = inlined_call_operand.hbm [shape: f32[189,256], index: 1, kind: input, shape index: {}]   ;;  %s249_s2 = inlined_call_operand.vmem [shape: f32[2,256], index: 2, kind: output, shape index: {}]  }
   0x1   :  { %s14_s11 = sshll.u32 %s248_s1, 4  ;;  %s16_s13 = sshll.u32 %s216_s12, 4  ;;  %s15_s11 = int_to_ptr.hbm [resolvable:$true] %s14_s11  ;;  %s17_s13 = int_to_ptr.vmem [resolvable:$true] %s16_s13 }
   0x2   :  { %s218_s15 = smov 16  }
   0x3   :  { %22 = dma.hbm_to_vmem [thread:$0]  %s15_s11, 6144, %s17_s13, [#allocation3], %s217_s14, %s217_s14, %s218_s15  }
   0x4   :  { %214 = dma.done.wait [#allocation3], 6144  }
   0x5   :  { %215 = vsyncadd [#allocation3], 4294961152  ;;  %v59_v0 = vld [vmem:[#allocation2 + $0xf8] sm:$0xff]  ;;  %v57_v1 = vld [vmem:[#allocation2 + $0xe8] sm:$0xff]  ;;  %vm84_vm0 = vcmask 1044480   ;;  %vm81_vm1 = vcmask 498688  }
   0x6   :  { %131 = vmatpush.msra.mxu2 %v59_v0  ;;  %v58_v2 = vld [vmem:[#allocation2 + $0xf0] sm:$0xff]  ;;  %v55_v3 = vld [vmem:[#allocation2 + $0xd8] sm:$0xff]  ;;  %v56_v4 = vld [vmem:[#allocation2 + $0xe0] sm:$0xff]  ;;  %vm174_vm2 = vcmask 1041408  }
   0x7   :  { %91 = vmatpush.msra.mxu0 %v58_v2  ;;  %v54_v5 = vld [vmem:[#allocation2 + $0xd0] sm:$0xff]  ;;  %v53_v6 = vld [vmem:[#allocation2 + $0xc8] sm:$0xff]  ;;  %v75_v7 = vld [vmem:[#allocation2 + $0x178] sm:$0x1f] }
   0x8   :  { %132 = vmatpush.msra.mxu2 %v57_v1  ;;  %v52_v8 = vld [vmem:[#allocation2 + $0xc0] sm:$0xff]  ;;  %185 = vmatpush.msk.msra.mxu3 %vm84_vm0, %v75_v7  ;;  %v73_v9 = vld [vmem:[#allocation2 + $0x168] sm:$0xff]  ;;  %v51_v10 = vld [vmem:[#allocation2 + $0xb8] sm:$0xff] }
   0x9   :  { %92 = vmatpush.msra.mxu0 %v56_v4  ;;  %v71_v11 = vld [vmem:[#allocation2 + $0x158] sm:$0xff]  ;;  %v50_v12 = vld [vmem:[#allocation2 + $0xb0] sm:$0xff]  ;;  %v49_v13 = vld [vmem:[#allocation2 + $0xa8] sm:$0xff] }
   0xa   :  { %133 = vmatpush.msra.mxu2 %v55_v3  ;;  %160 = vmatpush.msra.mxu3 %v73_v9  ;;  %v69_v14 = vld [vmem:[#allocation2 + $0x148] sm:$0xff]  ;;  %v74_v15 = vld [vmem:[#allocation2 + $0x170] sm:$0x1f]  ;;  %v48_v16 = vld [vmem:[#allocation2 + $0xa0] sm:$0xff] }
   0xb   :  { %93 = vmatpush.msra.mxu0 %v54_v5  ;;  %v72_v17 = vld [vmem:[#allocation2 + $0x160] sm:$0xff]  ;;  %v47_v18 = vld [vmem:[#allocation2 + $0x98] sm:$0xff]  ;;  %183 = vmatpush.msk.msra.mxu1 %vm84_vm0, %v74_v15  ;;  %v46_v20 = vld [vmem:[#allocation2 + $0x90] sm:$0xff] }
   0xc   :  { %134 = vmatpush.msra.mxu2 %v53_v6  ;;  %161 = vmatpush.msra.mxu3 %v71_v11  ;;  %v67_v19 = vld [vmem:[#allocation2 + $0x138] sm:$0xff]  ;;  %v70_v21 = vld [vmem:[#allocation2 + $0x150] sm:$0xff]  ;;  %v45_v22 = vld [vmem:[#allocation2 + $0x88] sm:$0xff] }
   0xd   :  { %94 = vmatpush.msra.mxu0 %v52_v8  ;;  %120 = vmatpush.msra.mxu1 %v72_v17  ;;  %v65_v23 = vld [vmem:[#allocation2 + $0x128] sm:$0xff]  ;;  %v44_v24 = vld [vmem:[#allocation2 + $0x80] sm:$0xff]  ;;  %v27_v26 = vld [vmem:[%s247_s0] sm:$0xf] }
   0xe   :  { %135 = vmatpush.msra.mxu2 %v51_v10  ;;  %162 = vmatpush.msra.mxu3 %v69_v14  ;;  %v68_v25 = vld [vmem:[#allocation2 + $0x140] sm:$0xff]  ;;  %v43_v27 = vld [vmem:[#allocation2 + $0x78] sm:$0xff]  ;;  %77 = vst [vmem:[#allocation1] ss:$4 sm:$0xff] %v27_v26  ;;  %v42_v29 = vld [vmem:[#allocation2 + $0x70] sm:$0xff] }
   0xf   :  { %95 = vmatpush.msra.mxu0 %v50_v12  ;;  %121 = vmatpush.msra.mxu1 %v70_v21  ;;  %v63_v28 = vld [vmem:[#allocation2 + $0x118] sm:$0xff]  ;;  %v66_v30 = vld [vmem:[#allocation2 + $0x130] sm:$0xff]  ;;  %v41_v31 = vld [vmem:[#allocation2 + $0x68] sm:$0xff] }
  0x10   :  { %136 = vmatpush.msra.mxu2 %v49_v13  ;;  %163 = vmatpush.msra.mxu3 %v67_v19  ;;  %v61_v32 = vld [vmem:[#allocation2 + $0x108] sm:$0xff]  ;;  %v40_v33 = vld [vmem:[#allocation2 + $0x60] sm:$0xff]  ;;  %v39_v35 = vld [vmem:[#allocation2 + $0x58] sm:$0xff] }
  0x11   :  { %96 = vmatpush.msra.mxu0 %v48_v16  ;;  %122 = vmatpush.msra.mxu1 %v68_v25  ;;  %v64_v34 = vld [vmem:[#allocation2 + $0x120] sm:$0xff]  ;;  %v38_v36 = vld [vmem:[#allocation2 + $0x50] sm:$0xff]  ;;  %v37_v37 = vld [vmem:[#allocation2 + $0x48] sm:$0xff] }
  0x12   :  { %137 = vmatpush.msra.mxu2 %v47_v18  ;;  %164 = vmatpush.msra.mxu3 %v65_v23  ;;  %v62_v38 = vld [vmem:[#allocation2 + $0x110] sm:$0xff]  ;;  %v36_v39 = vld [vmem:[#allocation2 + $0x40] sm:$0xff]  ;;  %v35_v41 = vld [vmem:[#allocation2 + $0x38] sm:$0xff] }
  0x13   :  { %97 = vmatpush.msra.mxu0 %v46_v20  ;;  %123 = vmatpush.msra.mxu1 %v66_v30  ;;  %v60_v42 = vld [vmem:[#allocation2 + $0x100] sm:$0xff]  ;;  %v34_v43 = vld [vmem:[#allocation2 + $0x30] sm:$0xff]  ;;  %v33_v44 = vld [vmem:[#allocation2 + $0x28] sm:$0xff] }
  0x14   :  { %138 = vmatpush.msra.mxu2 %v45_v22  ;;  %165 = vmatpush.msra.mxu3 %v63_v28  ;;  %v32_v45 = vld [vmem:[#allocation2 + $0x20] sm:$0xff]  ;;  %v31_v46 = vld [vmem:[#allocation2 + $0x18] sm:$0xff]  ;;  %v30_v47 = vld [vmem:[#allocation2 + $0x10] sm:$0xff] }
  0x15   :  { %98 = vmatpush.msra.mxu0 %v44_v24  ;;  %124 = vmatpush.msra.mxu1 %v64_v34  ;;  %v79_v40 = vld.sshfl [vmem:[#allocation1 + $0x8] sm:$0xff pattern:$0x73625140]  ;;  %v29_v48 = vld [vmem:[#allocation2 + $0x8] sm:$0xff] }
  0x16   :  { %139 = vmatpush.msra.mxu2 %v43_v27  ;;  %166 = vmatpush.msra.mxu3 %v61_v32  ;;  %v78_v49 = vld.sshfl [vmem:[#allocation1] sm:$0xff pattern:$0x73625140]  ;;  %v28_v50 = vld [vmem:[#allocation2] sm:$0xff] }
  0x17   :  { %99 = vmatpush.msra.mxu0 %v42_v29  ;;  %186 = vmatmul.msk.f32.vlgmr.msra.gmra.mxu3 %vm81_vm1, %v79_v40 }
  0x18   :  { %140 = vmatpush.msra.mxu2 %v41_v31  ;;  %125 = vmatpush.msra.mxu1 %v62_v38 }
  0x19   :  { %100 = vmatpush.msra.mxu0 %v40_v33 }
  0x1a   :  { %141 = vmatpush.msra.mxu2 %v39_v35  ;;  %126 = vmatpush.msra.mxu1 %v60_v42 }
  0x1b   :  { %101 = vmatpush.msra.mxu0 %v38_v36  ;;  %184 = vmatmul.msk.f32.vlgmr.msra.gmra.mxu1 %vm81_vm1, %v79_v40 }
  0x1c   :  { %142 = vmatpush.msra.mxu2 %v37_v37 }
  0x1d   :  { %102 = vmatpush.msra.mxu0 %v36_v39 }
  0x1e   :  { %143 = vmatpush.msra.mxu2 %v35_v41 }
  0x1f   :  { %103 = vmatpush.msra.mxu0 %v34_v43 }
  0x20   :  { %144 = vmatpush.msra.mxu2 %v33_v44 }
  0x21   :  { %104 = vmatpush.msra.mxu0 %v32_v45 }
  0x22   :  { %145 = vmatpush.msra.mxu2 %v31_v46 }
  0x23   :  { %105 = vmatpush.msra.mxu0 %v30_v47 }
  0x24   :  { %146 = vmatpush.msra.mxu2 %v29_v48 }
  0x25   :  { %147 = vmatmul.f32.vlgmr.msra.gmra.mxu2 %v78_v49  ;;  %106 = vmatpush.msra.mxu0 %v28_v50 }
  0x26   :  { %107 = vmatmul.f32.vlgmr.msra.gmra.mxu0 %v78_v49 }
  0x98   :  { %v128_v51 = vpop.f32.mrf.mxu1 }
  0x9a   :  { %v168_v52 = vpop.f32.mrf.mxu3 }
  0xa3   :  { %v108_v53 = vpop.f32.mrf.mxu0 }
  0xa4   :  { %v129_v56 = vadd.f32 %v128_v51, %v108_v53 }
  0xa8   :  { %v148_v54 = vpop.f32.mrf.mxu2 }
  0xa9   :  { %v169_v55 = vadd.f32 %v168_v52, %v148_v54 }
  0xab   :  { %v173_v57 = vrot.slane %v169_v55, 6 }
  0xad   :  { %v175_v58 = vsel %vm174_vm2, %v129_v56, %v173_v57 }
  0xae   :  { %177 = vst [vmem:[%s249_s2] sm:$0xf] %v175_v58 }
  0xaf   :  { %182 = vsyncpa [#allocation3], 1 }

</bundles_post_ra>
